<compile_context>
chip_gen: v6e
topology: v6e:2x2x1
jax: 0.10.0
libtpu: 0.0.40
codegen_flags: <defaults>
</compile_context>

<pallas_src>
import jax
import jax.numpy as jnp
import numpy as np
from jax.experimental import pallas as pl
from jax.experimental.pallas import tpu as pltpu


# ----------------------------- tiled matmul + bias -----------------------------
def matmul_bias_kernel(x_ref, w_ref, b_ref, o_ref):
    o_ref[...] = (
        jnp.dot(x_ref[...], w_ref[...], preferred_element_type=jnp.float32)
        + b_ref[...]
    ).astype(o_ref.dtype)


def matmul_bias(x, w, b, tm=256, tn=512):
    """x: (M, K), w: (K, N), b: (1, N) -> (M, N).  Tiled over M and N, full K."""
    M, K = x.shape
    N = w.shape[1]
    tm = min(tm, M)          # toy shapes -> single full block (exempt from
    tn = min(tn, N)          # (8,128)); big shapes -> 256/512 lane-dense tiles
    grid = (pl.cdiv(M, tm), pl.cdiv(N, tn))
    return pl.pallas_call(
        matmul_bias_kernel,
        out_shape=jax.ShapeDtypeStruct((M, N), jnp.float32),
        grid_spec=pltpu.PrefetchScalarGridSpec(
            num_scalar_prefetch=0,
            grid=grid,
            in_specs=[
                pl.BlockSpec((tm, K), lambda i, j: (i, 0)),
                pl.BlockSpec((K, tn), lambda i, j: (0, j)),
                pl.BlockSpec((1, tn), lambda i, j: (0, j)),
            ],
            out_specs=pl.BlockSpec((tm, tn), lambda i, j: (i, j)),
        ),
        compiler_params=pltpu.CompilerParams(
            dimension_semantics=("parallel", "parallel")),
    )(x, w, b)


# ----------------------------- GRU recurrence kernel -----------------------------
def gru_seq_kernel(xp_ref, whz_ref, wch_ref, h_out_ref, h_scratch):
    """One grid step processes Tc timesteps for one batch tile.

    xp_ref   : (Tc, Bt, 3H)  precomputed x@[Wrx|Wux|Wcx] + [br|bu|bc]
    whz_ref  : (H, 2H)       fused [Wrh | Wuh]
    wch_ref  : (H, H)        candidate h-weight
    h_out    : (Tc, Bt, H)   hidden states for this chunk / batch tile
    h_scratch: (Bt, H)       hidden state, resident across time chunks
    """
    H = wch_ref.shape[0]
    Tc = xp_ref.shape[0]

    # grid = (batch_tiles, time_chunks); re-init state at the first time chunk
    # of every batch tile (each megacore owns its own scratch).
    @pl.when(pl.program_id(1) == 0)
    def _():
        h_scratch[...] = jnp.zeros_like(h_scratch)

    def step(t, carry):
        xp = xp_ref[t]                     # (Bt, 3H), contiguous leading-dim slice
        h = h_scratch[...]                 # (Bt, H)

        # fused reset/update gates: one h-side MXU push instead of two
        ru = jnp.dot(h, whz_ref[...], preferred_element_type=jnp.float32) \
            + xp[:, :2 * H]
        r = jax.nn.sigmoid(ru[:, :H])
        u = jax.nn.sigmoid(ru[:, H:])

        # candidate state: r applied to h BEFORE the matmul (cat-style GRU)
        c = jnp.tanh(
            jnp.dot(r * h, wch_ref[...], preferred_element_type=jnp.float32)
            + xp[:, 2 * H:])

        h_new = c + u * (h - c)            # == (1 - u) * c + u * h
        h_scratch[...] = h_new
        h_out_ref[t] = h_new.astype(h_out_ref.dtype)
        return carry

    jax.lax.fori_loop(0, Tc, step, 0, unroll=(Tc <= 16))


def run_gru(xproj_tb3h, whz, wch, t_chunk=128, b_tile=256):
    """xproj_tb3h: (T, B, 3H) -> hiddens (T, B, H), time-major."""
    T, B, H3 = xproj_tb3h.shape
    H = wch.shape[0]
    Tc = min(t_chunk, T)
    if T % Tc != 0:          # TODO(synk): ragged final chunk; fine for toy/even T
        Tc = T
    Bt = min(b_tile, B)
    if B % Bt != 0:
        Bt = B
    return pl.pallas_call(
        gru_seq_kernel,
        out_shape=jax.ShapeDtypeStruct((T, B, H), jnp.float32),
        grid_spec=pltpu.PrefetchScalarGridSpec(
            num_scalar_prefetch=0,
            grid=(B // Bt, T // Tc),
            in_specs=[
                pl.BlockSpec((Tc, Bt, H3), lambda b, c: (c, b, 0)),  # x-proj chunk
                pl.BlockSpec((H, 2 * H), lambda b, c: (0, 0)),       # [Wrh|Wuh]
                pl.BlockSpec((H, H), lambda b, c: (0, 0)),           # Wch
            ],
            out_specs=pl.BlockSpec((Tc, Bt, H), lambda b, c: (c, b, 0)),
            scratch_shapes=[pltpu.VMEM((Bt, H), jnp.float32)],
        ),
        compiler_params=pltpu.CompilerParams(
            # batch tiles are independent (megacore); time chunks are sequential
            dimension_semantics=("parallel", "arbitrary")),
    )(xproj_tb3h, whz, wch)


# ----------------------------- full model forward -----------------------------
def fuse_params(p):
    """Fuse per-gate weights into the layouts the kernels consume."""
    return {
        "embed": p["embed"],
        "wx3": jnp.concatenate([p["wrx"], p["wux"], p["wcx"]], axis=1),  # (E, 3H)
        "bx3": jnp.concatenate([p["br"], p["bu"], p["bc"]], axis=1),     # (1, 3H)
        "whz": jnp.concatenate([p["wrh"], p["wuh"]], axis=1),            # (H, 2H)
        "wch": p["wch"],                                                 # (H, H)
        "w_out": p["w_out"],                                             # (H, V)
        "b_out": p["b_out"],                                             # (1, V)
    }


def gru_lang_model_forward(tokens, fused):
    """tokens: (B, T) int32 -> logits (B, T, V) f32."""
    B, T = tokens.shape
    H = fused["wch"].shape[0]
    V = fused["w_out"].shape[1]

    # Embedding gather directly in time-major layout (only the tiny int token
    # matrix is transposed, never the activations).
    # TODO(synk): the gather itself stays in XLA (vocab table may exceed VMEM).
    emb_tbe = jnp.take(fused["embed"], tokens.T, axis=0)        # (T, B, E)
    E = emb_tbe.shape[-1]

    # Hoisted x-projection for all gates at once: one big MXU-friendly matmul.
    xproj = matmul_bias(emb_tbe.reshape(T * B, E),
                        fused["wx3"], fused["bx3"])             # (T*B, 3H)

    # Serial recurrence (only the h-side matmuls remain per step).
    hiddens = run_gru(xproj.reshape(T, B, 3 * H),
                      fused["whz"], fused["wch"])               # (T, B, H)

    # Relayout the SMALL hiddens (H-wide) to batch-major, then project so the
    # BIG logits (V-wide) come out directly in (B, T, V) order -- no logits
    # transpose, just a reshape.
    hiddens_bt = hiddens.transpose(1, 0, 2).reshape(B * T, H)   # (B*T, H)
    logits_bt = matmul_bias(hiddens_bt, fused["w_out"], fused["b_out"])  # (B*T, V)
    return logits_bt.reshape(B, T, V)


# ----------------------------- pure-JAX reference -----------------------------
def gru_lang_model_ref(tokens, params):
    B, T = tokens.shape
    H = params["wrh"].shape[0]
    emb = jnp.take(params["embed"], tokens, axis=0)  # (B, T, E)
    h = jnp.zeros((B, H), jnp.float32)
    hs = []
    for t in range(T):
        x = emb[:, t, :]
        r = jax.nn.sigmoid(h @ params["wrh"] + x @ params["wrx"] + params["br"])
        u = jax.nn.sigmoid(h @ params["wuh"] + x @ params["wux"] + params["bu"])
        c = jnp.tanh((r * h) @ params["wch"] + x @ params["wcx"] + params["bc"])
        h = (1.0 - u) * c + u * h
        hs.append(h)
    hbt = jnp.stack(hs, axis=1)  # (B, T, H)
    return hbt @ params["w_out"] + params["b_out"]


# ----------------------------- params -----------------------------
def init_params(key, embed_dim, vocab_size, hidden_units):
    ks = jax.random.split(key, 12)
    s = 0.1
    H, E, V = hidden_units, embed_dim, vocab_size
    return {
        "embed": jax.random.normal(ks[0], (V, E), jnp.float32) * s,
        # gate Linears stored as (in, out) = PyTorch weight transposed, split
        # into hidden part (first H inputs) and embedding part (last E inputs).
        "wrh": jax.random.normal(ks[1], (H, H), jnp.float32) * s,
        "wrx": jax.random.normal(ks[2], (E, H), jnp.float32) * s,
        "br":  jax.random.normal(ks[3], (1, H), jnp.float32) * s,
        "wuh": jax.random.normal(ks[4], (H, H), jnp.float32) * s,
        "wux": jax.random.normal(ks[5], (E, H), jnp.float32) * s,
        "bu":  jax.random.normal(ks[6], (1, H), jnp.float32) * s,
        "wch": jax.random.normal(ks[7], (H, H), jnp.float32) * s,
        "wcx": jax.random.normal(ks[8], (E, H), jnp.float32) * s,
        "bc":  jax.random.normal(ks[9], (1, H), jnp.float32) * s,
        "w_out": jax.random.normal(ks[10], (H, V), jnp.float32) * s,
        "b_out": jax.random.normal(ks[11], (1, V), jnp.float32) * s,
    }


if __name__ == "__main__":
    EMBED_DIM, VOCAB_SIZE, HIDDEN_UNITS = 16, 64, 32
    BATCH, SEQ = 2, 8

    key = jax.random.PRNGKey(0)
    kp, kt = jax.random.split(key)
    params = init_params(kp, EMBED_DIM, VOCAB_SIZE, HIDDEN_UNITS)
    fused = fuse_params(params)
    tokens = jax.random.randint(kt, (BATCH, SEQ), 0, VOCAB_SIZE, dtype=jnp.int32)

    logits = jax.block_until_ready(gru_lang_model_forward(tokens, fused))
    ref = jax.block_until_ready(gru_lang_model_ref(tokens, params))

    assert logits.shape == (BATCH, SEQ, VOCAB_SIZE), logits.shape
    np.testing.assert_allclose(np.asarray(logits), np.asarray(ref),
                               rtol=2e-3, atol=2e-3)
    print("KERNEL_OK")
</pallas_src>

<mosaic_0001>
module attributes {stable_mosaic.version = 11 : i64} {
  func.func @matmul_bias_kernel(%arg0: i32, %arg1: i32, %arg2: memref<16x16xf32, #tpu.memory_space<vmem>>, %arg3: memref<16x96xf32, #tpu.memory_space<vmem>>, %arg4: memref<1x96xf32, #tpu.memory_space<vmem>>, %arg5: memref<16x96xf32, #tpu.memory_space<vmem>>) attributes {dimension_semantics = [#tpu.dimension_semantics<parallel>, #tpu.dimension_semantics<parallel>], iteration_bounds = array<i64: 1, 1>, scalar_prefetch = 0 : i64, scratch_operands = 0 : i64, tpu.core_type = #tpu.core_type<tc>, window_params = [{transform_indices = @transform_0, window_bounds = array<i64: 16, 16>}, {transform_indices = @transform_1, window_bounds = array<i64: 16, 96>}, {transform_indices = @transform_2, window_bounds = array<i64: 1, 96>}, {transform_indices = @transform_3, window_bounds = array<i64: 16, 96>}]} {
    %c0 = arith.constant 0 : index
    %c0_0 = arith.constant 0 : index
    %0 = vector.load %arg2[%c0, %c0_0] : memref<16x16xf32, #tpu.memory_space<vmem>>, vector<16x16xf32>
    %c0_1 = arith.constant 0 : index
    %c0_2 = arith.constant 0 : index
    %1 = vector.load %arg3[%c0_1, %c0_2] : memref<16x96xf32, #tpu.memory_space<vmem>>, vector<16x96xf32>
    %cst = arith.constant dense<0.000000e+00> : vector<16x96xf32>
    %2 = tpu.matmul %0, %1, %cst {dimension_numbers = #tpu.dot_dimension_numbers<[1], [0], [0], [1], [0, 0, 1, 1], [], []>} : vector<16x16xf32>, vector<16x96xf32>, vector<16x96xf32> -> vector<16x96xf32>
    %c0_3 = arith.constant 0 : index
    %c0_4 = arith.constant 0 : index
    %3 = vector.load %arg4[%c0_3, %c0_4] : memref<1x96xf32, #tpu.memory_space<vmem>>, vector<1x96xf32>
    %4 = vector.broadcast %3 : vector<1x96xf32> to vector<16x96xf32>
    %5 = arith.addf %2, %4 : vector<16x96xf32>
    %c0_5 = arith.constant 0 : index
    %c0_6 = arith.constant 0 : index
    %6 = vector.load %arg5[%c0_5, %c0_6] : memref<16x96xf32, #tpu.memory_space<vmem>>, vector<16x96xf32>
    tpu.vector_store %arg5[%c0_5, %c0_6], %5 {strides = array<i32>} : memref<16x96xf32, #tpu.memory_space<vmem>>, vector<16x96xf32>,
    return
  }
  func.func @transform_0(%arg0: i32, %arg1: i32) -> (i32, i32) {
    %c0_i32 = arith.constant 0 : i32
    %c0_i32_0 = arith.constant 0 : i32
    return %arg0, %c0_i32 : i32, i32
  }
  func.func @transform_1(%arg0: i32, %arg1: i32) -> (i32, i32) {
    %c0_i32 = arith.constant 0 : i32
    %c0_i32_0 = arith.constant 0 : i32
    return %c0_i32, %arg1 : i32, i32
  }
  func.func @transform_2(%arg0: i32, %arg1: i32) -> (i32, i32) {
    %c0_i32 = arith.constant 0 : i32
    %c0_i32_0 = arith.constant 0 : i32
    return %c0_i32, %arg1 : i32, i32
  }
  func.func @transform_3(%arg0: i32, %arg1: i32) -> (i32, i32) {
    %c0_i32 = arith.constant 0 : i32
    return %arg0, %arg1 : i32, i32
  }
}

</mosaic_0001>

<bundles_post_ra>
// kernel: tpu_custom_call.1
= control target key start
LH: loop header
LB: loop body
LE: loop exit
PB: predicated region body
PF: predicated region fallthrough
CT: control target
= control target key end

     0   :  { %8 = vsyncpa [#allocation3], 0  ;;  %s288_s0 = inlined_call_operand.hbm [shape: f32[16,16], index: 0, kind: input, shape index: {}]   ;;  %s289_s1 = inlined_call_operand.hbm [shape: f32[16,96], index: 1, kind: input, shape index: {}]   ;;  %s290_s2 = inlined_call_operand.vmem [shape: f32[1,96], index: 2, kind: input, shape index: {}]   ;;  %s291_s3 = inlined_call_operand.hbm [shape: f32[16,96], index: 3, kind: output, shape index: {}]  }
   0x1   :  { %9 = vsyncpa [#allocation6], 0 }
   0x2   :  { %10 = vsyncpa [#allocation4], 0  ;;  %s242_s12 = smov [#allocation2]  }
   0x3   :  { %s16_s13 = sshll.u32 %s242_s12, 4  ;;  %s17_s13 = int_to_ptr.vmem [resolvable:$true] %s16_s13 }
   0x4   :  { %s184_s14 = scalar_lea.vmem %s17_s13, 256  ;;  %p189_p1 = scmp.lt.s32.totalorder %s17_s13, %s17_s13 }
   0x5   :  { %p185_p0 = scmp.ne.s32.totalorder %s17_s13, %s184_s14  ;;  %p190_p2 = scmp.lt.s32.totalorder %s184_s14, %s184_s14 }
   0x7   :  { %p191_p3 = por %p190_p2, %p189_p1 }
   0x9   :  { %p192_p4 = pnand %p191_p3, %p185_p0 }
   0xb   :  { %195 = shalt.err (!%p192_p4)
}
   0xc   :  { %s243_s15 = smov 128   ;;  %s244_s16 = smov 8  }
   0xd   :  { %22 = dma.hbm_to_vmem [thread:$0]  %s288_s0, 256, %s17_s13, [#allocation3], %s243_s15, %s243_s15, %s244_s16  }
   0xe   :  { %s245_s19 = smov [#allocation5]  }
   0xf   :  { %s28_s20 = sshll.u32 %s245_s19, 4  ;;  %s29_s20 = int_to_ptr.vmem [resolvable:$true] %s28_s20 }
  0x10   :  { %s204_s21 = scalar_lea.vmem %s29_s20, 256  ;;  %p209_p6 = scmp.lt.s32.totalorder %s29_s20, %s29_s20 }
  0x11   :  { %p205_p5 = scmp.ne.s32.totalorder %s29_s20, %s204_s21  ;;  %p210_p7 = scmp.lt.s32.totalorder %s204_s21, %s204_s21 }
  0x13   :  { %p211_p8 = por %p210_p7, %p209_p6 }
  0x15   :  { %p212_p9 = pnand %p211_p8, %p205_p5 }
  0x17   :  { %215 = shalt.err (!%p212_p9)
}
  0x18   :  { %34 = dma.hbm_to_vmem [thread:$0]  %s289_s1, 256, %s29_s20, [#allocation6], %s243_s15, %s243_s15, %s244_s16  }
  0x19   :  { %236 = dma.done.wait [#allocation3], 256  }
  0x1a   :  { %237 = vsyncadd [#allocation3], 4294967040 }
  0x1b   :  { %238 = dma.done.wait [#allocation6], 256  }
  0x1c   :  { %239 = vsyncadd [#allocation6], 4294967040  ;;  %vm54_vm0 = vcmask 130048   ;;  %v46_v0 = vld [vmem:[#allocation5 + $0x8] sm:$0xff]  ;;  %v45_v1 = vld [vmem:[#allocation5] sm:$0xff]  ;;  %vm136_vm1 = vcmask 785408  }
  0x1d   :  { %v43_v2 = vld [vmem:[#allocation2] sm:$0xff]  ;;  %164 = vmatprep.subr.mxu0 %v46_v0  ;;  %v44_v3 = vld [vmem:[#allocation2 + $0x8] sm:$0xff]  ;;  %s246_s1 = smov [#allocation7]  }
  0x1e   :  { %168 = vmatprep.mubr.msk.f32.mxu0 %vm54_vm0, %v43_v2  ;;  %165 = vmatpush3.msra.mxu0 %v46_v0  ;;  %v157_v4 = vld [vmem:[%s290_s2] ss:$0 sm:$0xff]  ;;  %s144_s25 = sshll.u32 %s246_s1, 4  ;;  %s145_s25 = int_to_ptr.vmem [resolvable:$true] %s144_s25 }
  0x1f   :  { %166 = vmatprep.subr.mxu0 %v45_v1  ;;  %s216_s26 = scalar_lea.vmem %s145_s25, 256  ;;  %p221_p11 = scmp.lt.s32.totalorder %s145_s25, %s145_s25 }
  0x20   :  { %167 = vmatpush3.msra.mxu0 %v45_v1  ;;  %p217_p10 = scmp.ne.s32.totalorder %s145_s25, %s216_s26  ;;  %p222_p12 = scmp.lt.s32.totalorder %s216_s26, %s216_s26 }
  0x21   :  { %169 = vmatmul.mubr.msk.f32.vlgmr.msra.gmra.mxu0 %vm54_vm0, %v44_v3 }
  0x22   :  { %p223_p13 = por %p222_p12, %p221_p11 }
  0x24   :  { %p224_p0 = pnand %p223_p13, %p217_p10 }
  0xe1   :  { %v170_v5 = vpop.f32.mrf.mxu0 }
  0xe2   :  { %v133_v6 = vadd.f32 %v170_v5, %v157_v4 }
  0xe3   :  { %v127_v7 = vpop.f32.mrf.mxu0 }
  0xe4   :  { %v128_v8 = vadd.f32 %v157_v4, %v127_v7  ;;  %138 = vst.msk [vmem:[#allocation7 + $0x8] sm:$0xff] %vm136_vm1, %v133_v6 }
  0xe6   :  { %137 = vst.msk [vmem:[#allocation7] sm:$0xff] %vm136_vm1, %v128_v8 }
  0xe7   :  { %227 = shalt.err (!%p224_p0)
}
  0xe8   :  { %150 = dma.vmem_to_hbm [thread:$0]  %s145_s25, 256, %s291_s3, [#allocation4], %s243_s15, %s243_s15, %s244_s16  }
  0xe9   :  { %240 = dma.done.wait [#allocation4], 256  }
  0xea   :  { %241 = vsyncadd [#allocation4], 4294967040 }
  0xeb   :  { %154 = vsyncpa [#allocation3], 1 }
  0xec   :  { %155 = vsyncpa [#allocation6], 1 }
  0xed   :  { %156 = vsyncpa [#allocation4], 1 }

</bundles_post_ra>
